<compile_context>
chip_gen: v5e
topology: v5e:2x2
jax: 0.10.0
libtpu: 0.0.40
codegen_flags: <defaults>
</compile_context>

<pallas_src>
from functools import partial

import numpy as np
import jax
import jax.numpy as jnp
from jax.experimental import pallas as pl
from jax.experimental.pallas import tpu as pltpu


def _mask_path_kernel(rowptr_ref, deg_ref, col_ref, u_start_ref, u_walk_ref,
                      n_id_ref, e_id_ref, mask_ref,
                      *, num_nodes, num_edges, num_walks, walk_length):
    N, E, W, L = num_nodes, num_edges, num_walks, walk_length

    rowptr_col = rowptr_ref[...]       # (N, 1) int32: exclusive cumsum of deg
    deg_col = deg_ref[...]             # (N, 1) int32: out-degree per node
    col_col = col_ref[...]             # (E, 1) int32: destination of CSR edge e

    # ---- degree-proportional start sampling (multinomial w/ replacement) ----
    # Sampling a node with prob deg(n)/sum(deg) == sampling a uniform random
    # edge k and taking its source node, i.e. searchsorted(rowptr, k, 'right')-1.
    # u_start is already tiled walks_per_node times (== start.repeat(wpn)).
    u0 = u_start_ref[...]                                          # (1, W)
    k = jnp.minimum((u0 * float(E)).astype(jnp.int32), E - 1)      # (1, W)
    cur = jnp.sum((rowptr_col <= k).astype(jnp.int32),
                  axis=0, keepdims=True) - 1                       # (1, W)
    n_id_ref[0:1, :] = cur

    node_iota = jax.lax.broadcasted_iota(jnp.int32, (N, W), 0)     # small, hoisted
    ones_w = jnp.ones((W, 1), jnp.float32)
    counts = jnp.zeros((E, 1), jnp.float32)                        # walk hits per edge

    # ---- uniform random walk (p = q = 1) --------------------------------
    # TODO(synk): for large walk_length switch this static unroll to
    # lax.fori_loop(..., unroll=True) to bound live ranges.
    for t in range(L):
        onehot_n = node_iota == cur                                              # (N, W)
        rp = jnp.sum(jnp.where(onehot_n, rowptr_col, 0), axis=0, keepdims=True)  # rowptr[cur]
        dg = jnp.sum(jnp.where(onehot_n, deg_col, 0), axis=0, keepdims=True)     # deg[cur]

        u = u_walk_ref[t:t + 1, :]                                               # (1, W)
        off = jnp.minimum((u * dg.astype(jnp.float32)).astype(jnp.int32),
                          jnp.maximum(dg - 1, 0))
        has_nbr = dg > 0
        # torch_cluster emits e_id = -1 for isolated nodes; mask[-1] then hits
        # the last edge, so replicate that by pointing at edge E-1 (documented
        # faithful reproduction of that wraparound).
        e = jnp.where(has_nbr, rp + off, E - 1)                                  # (1, W)

        edge_iota = jax.lax.broadcasted_iota(jnp.int32, (E, W), 0)               # inline
        onehot_e = edge_iota == e                                                # (E, W)
        # next node = col[e]  (exact int32 compare-select gather)
        nxt = jnp.sum(jnp.where(onehot_e, col_col, 0), axis=0, keepdims=True)    # (1, W)
        nxt = jnp.where(has_nbr, nxt, cur)
        # used-edge scatter on the MXU: counts[j] += #walks that used edge j
        counts = counts + jnp.dot(onehot_e.astype(jnp.float32), ones_w,
                                  preferred_element_type=jnp.float32)            # (E, 1)

        n_id_ref[t + 1:t + 2, :] = nxt
        e_id_ref[t:t + 1, :] = e
        cur = nxt

    mask_ref[...] = (counts == 0.0).astype(jnp.int32)              # keep-mask (E, 1)


def mask_path_pallas(edge_index, *, walks_per_node=2, walk_length=4, r=0.5,
                     num_nodes=None, seed=0):
    edge_index = jnp.asarray(edge_index, dtype=jnp.int32)
    if num_nodes is None:
        num_nodes = int(jnp.max(edge_index)) + 1
    N = int(num_nodes)
    E = int(edge_index.shape[1])
    L = int(walk_length)
    assert 0.0 < r <= 1.0
    S = int(r * N)
    assert S >= 1, "r * num_nodes must be >= 1"
    W = S * walks_per_node

    row = edge_index[0]
    col = edge_index[1]
    # rowptr / degree precomputed once in the wrapper (review item 1).
    deg = jnp.zeros((N,), jnp.int32).at[row].add(1)
    rowptr = jnp.concatenate(
        [jnp.zeros((1,), jnp.int32), jnp.cumsum(deg, dtype=jnp.int32)])[:N]

    key = jax.random.PRNGKey(seed)
    k_start, k_walk = jax.random.split(key)
    u_start = jax.random.uniform(k_start, (1, S), jnp.float32)
    u_start = jnp.tile(u_start, (1, walks_per_node))     # start.repeat(walks_per_node)
    u_walk = jax.random.uniform(k_walk, (L, W), jnp.float32)

    kernel = partial(_mask_path_kernel, num_nodes=N, num_edges=E,
                     num_walks=W, walk_length=L)

    vmem = pl.BlockSpec(memory_space=pltpu.MemorySpace.VMEM)
    n_id_t, e_id_t, mask_col = pl.pallas_call(
        kernel,
        out_shape=(
            jax.ShapeDtypeStruct((L + 1, W), jnp.int32),   # n_id, transposed / lane-dense
            jax.ShapeDtypeStruct((L, W), jnp.int32),       # e_id, transposed / lane-dense
            jax.ShapeDtypeStruct((E, 1), jnp.int32),       # keep-mask
        ),
        in_specs=[vmem, vmem, vmem, vmem, vmem],
        out_specs=(vmem, vmem, vmem),
    )(rowptr.reshape(N, 1), deg.reshape(N, 1), col.reshape(E, 1),
      u_start, u_walk)

    n_id = n_id_t.T               # (W, L+1)
    e_id = e_id_t.T               # (W, L)
    mask = mask_col.reshape(E)    # (E,) 1 = keep
    return n_id, e_id, mask


def _to_undirected_np(edge_index):
    # concat with flipped edges and coalesce (sorted unique columns),
    # matching torch_geometric.utils.to_undirected semantics.
    ei = np.concatenate([edge_index, edge_index[::-1]], axis=1)
    return np.unique(ei, axis=1)


def mask_path_forward(edge_index, *, walks_per_node=2, walk_length=4, r=0.5,
                      num_nodes=None, undirected=True, seed=0):
    edge_index_j = jnp.asarray(edge_index, dtype=jnp.int32)
    n_id, e_id, mask = mask_path_pallas(
        edge_index_j, walks_per_node=walks_per_node, walk_length=walk_length,
        r=r, num_nodes=num_nodes, seed=seed)
    # dense gather stays on device: edge_index[:, e_id] -> (2, W, L)
    masked_edges = jnp.take(edge_index_j, e_id, axis=1)
    jax.block_until_ready((n_id, e_id, mask, masked_edges))

    # TODO(synk): boolean compaction (edge_index[:, mask]) and to_undirected
    # coalescing have data-dependent output shapes -> no static-shape Pallas
    # equivalent; done on host from the kernel's mask output.
    ei = np.asarray(edge_index_j)
    keep = np.asarray(mask).astype(bool)
    remaining_edges = ei[:, keep]
    if undirected:
        remaining_edges = _to_undirected_np(remaining_edges)
    return remaining_edges, np.asarray(masked_edges), np.asarray(n_id), np.asarray(e_id)


if __name__ == "__main__":
    # Deterministic small graph: a ring over N=16 nodes, both directions,
    # CSR-coalesced (sorted by source node).  E = 32 edges.
    N = 16
    edges = []
    for i in range(N):
        for j in sorted([(i - 1) % N, (i + 1) % N]):
            edges.append((i, j))
    edge_index = np.array(edges, dtype=np.int32).T          # (2, 32)

    key = jax.random.PRNGKey(0)
    seed = int(jax.random.randint(key, (), 0, 2**31 - 1))

    remaining_edges, masked_edges, n_id, e_id = mask_path_forward(
        edge_index, walks_per_node=2, walk_length=4, r=0.5,
        num_nodes=N, undirected=True, seed=seed)

    W, L = 16, 4
    # basic sanity checks
    assert masked_edges.shape == (2, W, L)
    assert n_id.shape == (W, L + 1) and e_id.shape == (W, L)
    assert remaining_edges.ndim == 2 and remaining_edges.shape[0] == 2
    assert remaining_edges.shape[1] <= 2 * edge_index.shape[1]
    assert np.all((n_id >= 0) & (n_id < N))
    assert np.all((e_id >= 0) & (e_id < edge_index.shape[1]))
    # every walk edge must connect consecutive walk nodes
    assert np.all(edge_index[0, e_id] == n_id[:, :-1])
    assert np.all(edge_index[1, e_id] == n_id[:, 1:])

    print("KERNEL_OK")
</pallas_src>

<mosaic_0001>
module attributes {stable_mosaic.version = 11 : i64} {
  func.func @_mask_path_kernel(%arg0: memref<16x1xi32, #tpu.memory_space<vmem>>, %arg1: memref<16x1xi32, #tpu.memory_space<vmem>>, %arg2: memref<32x1xi32, #tpu.memory_space<vmem>>, %arg3: memref<1x16xf32, #tpu.memory_space<vmem>>, %arg4: memref<4x16xf32, #tpu.memory_space<vmem>>, %arg5: memref<5x16xi32, #tpu.memory_space<vmem>>, %arg6: memref<4x16xi32, #tpu.memory_space<vmem>>, %arg7: memref<32x1xi32, #tpu.memory_space<vmem>>) attributes {dimension_semantics = [], scalar_prefetch = 0 : i64, scratch_operands = 0 : i64, tpu.core_type = #tpu.core_type<tc>} {
    %c0 = arith.constant 0 : index
    %c0_0 = arith.constant 0 : index
    %0 = vector.load %arg0[%c0, %c0_0] : memref<16x1xi32, #tpu.memory_space<vmem>>, vector<16x1xi32>
    %c0_1 = arith.constant 0 : index
    %c0_2 = arith.constant 0 : index
    %1 = vector.load %arg1[%c0_1, %c0_2] : memref<16x1xi32, #tpu.memory_space<vmem>>, vector<16x1xi32>
    %c0_3 = arith.constant 0 : index
    %c0_4 = arith.constant 0 : index
    %2 = vector.load %arg2[%c0_3, %c0_4] : memref<32x1xi32, #tpu.memory_space<vmem>>, vector<32x1xi32>
    %c0_5 = arith.constant 0 : index
    %c0_6 = arith.constant 0 : index
    %3 = vector.load %arg3[%c0_5, %c0_6] : memref<1x16xf32, #tpu.memory_space<vmem>>, vector<1x16xf32>
    %cst = arith.constant 3.200000e+01 : f32
    %4 = vector.broadcast %cst : f32 to vector<1x16xf32>
    %5 = arith.mulf %3, %4 : vector<1x16xf32>
    %6 = arith.fptosi %5 : vector<1x16xf32> to vector<1x16xi32>
    %c31_i32 = arith.constant 31 : i32
    %7 = vector.broadcast %c31_i32 : i32 to vector<1x16xi32>
    %8 = arith.minsi %6, %7 : vector<1x16xi32>
    %9 = vector.broadcast %0 : vector<16x1xi32> to vector<16x16xi32>
    %10 = vector.broadcast %8 : vector<1x16xi32> to vector<16x16xi32>
    %11 = arith.cmpi sle, %9, %10 : vector<16x16xi32>
    %12 = arith.extui %11 : vector<16x16xi1> to vector<16x16xi32>
    %cst_7 = arith.constant dense<0> : vector<16xi32>
    %13 = vector.multi_reduction <add>, %12, %cst_7 [0] : vector<16x16xi32> to vector<16xi32>
    %14 = vector.shape_cast %13 : vector<16xi32> to vector<1x16xi32>
    %c1_i32 = arith.constant 1 : i32
    %15 = vector.broadcast %c1_i32 : i32 to vector<1x16xi32>
    %16 = arith.subi %14, %15 : vector<1x16xi32>
    %c0_8 = arith.constant 0 : index
    %c0_9 = arith.constant 0 : index
    %17 = vector.load %arg5[%c0_8, %c0_9] : memref<5x16xi32, #tpu.memory_space<vmem>>, vector<1x16xi32>
    tpu.vector_store %arg5[%c0_8, %c0_9], %16 {strides = array<i32>} : memref<5x16xi32, #tpu.memory_space<vmem>>, vector<1x16xi32>,
    %18 = tpu.iota {dimensions = array<i32: 0>} : vector<16x16xi32>
    %cst_10 = arith.constant 1.000000e+00 : f32
    %19 = vector.broadcast %cst_10 : f32 to vector<16x1xf32>
    %cst_11 = arith.constant 0.000000e+00 : f32
    %20 = vector.broadcast %cst_11 : f32 to vector<32x1xf32>
    %21 = vector.broadcast %16 : vector<1x16xi32> to vector<16x16xi32>
    %22 = arith.cmpi eq, %18, %21 : vector<16x16xi32>
    %c0_i32 = arith.constant 0 : i32
    %23 = vector.shape_cast %0 : vector<16x1xi32> to vector<16x1xi32>
    %24 = vector.broadcast %23 : vector<16x1xi32> to vector<16x16xi32>
    %25 = vector.broadcast %c0_i32 : i32 to vector<16x16xi32>
    %26 = arith.select %22, %24, %25 : vector<16x16xi1>, vector<16x16xi32>
    %cst_12 = arith.constant dense<0> : vector<16xi32>
    %27 = vector.multi_reduction <add>, %26, %cst_12 [0] : vector<16x16xi32> to vector<16xi32>
    %28 = vector.shape_cast %27 : vector<16xi32> to vector<1x16xi32>
    %c0_i32_13 = arith.constant 0 : i32
    %29 = vector.shape_cast %1 : vector<16x1xi32> to vector<16x1xi32>
    %30 = vector.broadcast %29 : vector<16x1xi32> to vector<16x16xi32>
    %31 = vector.broadcast %c0_i32_13 : i32 to vector<16x16xi32>
    %32 = arith.select %22, %30, %31 : vector<16x16xi1>, vector<16x16xi32>
    %cst_14 = arith.constant dense<0> : vector<16xi32>
    %33 = vector.multi_reduction <add>, %32, %cst_14 [0] : vector<16x16xi32> to vector<16xi32>
    %34 = vector.shape_cast %33 : vector<16xi32> to vector<1x16xi32>
    %c0_15 = arith.constant 0 : index
    %c0_16 = arith.constant 0 : index
    %35 = vector.load %arg4[%c0_15, %c0_16] : memref<4x16xf32, #tpu.memory_space<vmem>>, vector<1x16xf32>
    %36 = arith.sitofp %34 : vector<1x16xi32> to vector<1x16xf32>
    %37 = arith.mulf %35, %36 : vector<1x16xf32>
    %38 = arith.fptosi %37 : vector<1x16xf32> to vector<1x16xi32>
    %c1_i32_17 = arith.constant 1 : i32
    %39 = vector.broadcast %c1_i32_17 : i32 to vector<1x16xi32>
    %40 = arith.subi %34, %39 : vector<1x16xi32>
    %c0_i32_18 = arith.constant 0 : i32
    %41 = vector.broadcast %c0_i32_18 : i32 to vector<1x16xi32>
    %42 = arith.maxsi %40, %41 : vector<1x16xi32>
    %43 = arith.minsi %38, %42 : vector<1x16xi32>
    %c0_i32_19 = arith.constant 0 : i32
    %44 = vector.broadcast %c0_i32_19 : i32 to vector<1x16xi32>
    %45 = arith.cmpi sgt, %34, %44 : vector<1x16xi32>
    %46 = arith.addi %28, %43 : vector<1x16xi32>
    %c31_i32_20 = arith.constant 31 : i32
    %47 = vector.broadcast %c31_i32_20 : i32 to vector<1x16xi32>
    %48 = arith.select %45, %46, %47 : vector<1x16xi1>, vector<1x16xi32>
    %49 = tpu.iota {dimensions = array<i32: 0>} : vector<32x16xi32>
    %50 = vector.broadcast %48 : vector<1x16xi32> to vector<32x16xi32>
    %51 = arith.cmpi eq, %49, %50 : vector<32x16xi32>
    %c0_i32_21 = arith.constant 0 : i32
    %52 = vector.shape_cast %2 : vector<32x1xi32> to vector<32x1xi32>
    %53 = vector.broadcast %52 : vector<32x1xi32> to vector<32x16xi32>
    %54 = vector.broadcast %c0_i32_21 : i32 to vector<32x16xi32>
    %55 = arith.select %51, %53, %54 : vector<32x16xi1>, vector<32x16xi32>
    %cst_22 = arith.constant dense<0> : vector<16xi32>
    %56 = vector.multi_reduction <add>, %55, %cst_22 [0] : vector<32x16xi32> to vector<16xi32>
    %57 = vector.shape_cast %56 : vector<16xi32> to vector<1x16xi32>
    %58 = arith.select %45, %57, %16 : vector<1x16xi1>, vector<1x16xi32>
    %59 = arith.extui %51 : vector<32x16xi1> to vector<32x16xi32>
    %60 = arith.sitofp %59 : vector<32x16xi32> to vector<32x16xf32>
    %cst_23 = arith.constant dense<0.000000e+00> : vector<32x1xf32>
    %61 = tpu.matmul %60, %19, %cst_23 {dimension_numbers = #tpu.dot_dimension_numbers<[1], [0], [0], [1], [0, 0, 1, 1], [], []>} : vector<32x16xf32>, vector<16x1xf32>, vector<32x1xf32> -> vector<32x1xf32>
    %62 = arith.addf %20, %61 : vector<32x1xf32>
    %c1 = arith.constant 1 : index
    %c0_24 = arith.constant 0 : index
    %63 = vector.load %arg5[%c1, %c0_24] : memref<5x16xi32, #tpu.memory_space<vmem>>, vector<1x16xi32>
    tpu.vector_store %arg5[%c1, %c0_24], %58 {strides = array<i32>} : memref<5x16xi32, #tpu.memory_space<vmem>>, vector<1x16xi32>,
    %c0_25 = arith.constant 0 : index
    %c0_26 = arith.constant 0 : index
    %64 = vector.load %arg6[%c0_25, %c0_26] : memref<4x16xi32, #tpu.memory_space<vmem>>, vector<1x16xi32>
    tpu.vector_store %arg6[%c0_25, %c0_26], %48 {strides = array<i32>} : memref<4x16xi32, #tpu.memory_space<vmem>>, vector<1x16xi32>,
    %65 = vector.broadcast %58 : vector<1x16xi32> to vector<16x16xi32>
    %66 = arith.cmpi eq, %18, %65 : vector<16x16xi32>
    %c0_i32_27 = arith.constant 0 : i32
    %67 = vector.shape_cast %0 : vector<16x1xi32> to vector<16x1xi32>
    %68 = vector.broadcast %67 : vector<16x1xi32> to vector<16x16xi32>
    %69 = vector.broadcast %c0_i32_27 : i32 to vector<16x16xi32>
    %70 = arith.select %66, %68, %69 : vector<16x16xi1>, vector<16x16xi32>
    %cst_28 = arith.constant dense<0> : vector<16xi32>
    %71 = vector.multi_reduction <add>, %70, %cst_28 [0] : vector<16x16xi32> to vector<16xi32>
    %72 = vector.shape_cast %71 : vector<16xi32> to vector<1x16xi32>
    %c0_i32_29 = arith.constant 0 : i32
    %73 = vector.shape_cast %1 : vector<16x1xi32> to vector<16x1xi32>
    %74 = vector.broadcast %73 : vector<16x1xi32> to vector<16x16xi32>
    %75 = vector.broadcast %c0_i32_29 : i32 to vector<16x16xi32>
    %76 = arith.select %66, %74, %75 : vector<16x16xi1>, vector<16x16xi32>
    %cst_30 = arith.constant dense<0> : vector<16xi32>
    %77 = vector.multi_reduction <add>, %76, %cst_30 [0] : vector<16x16xi32> to vector<16xi32>
    %78 = vector.shape_cast %77 : vector<16xi32> to vector<1x16xi32>
    %c1_31 = arith.constant 1 : index
    %c0_32 = arith.constant 0 : index
    %79 = vector.load %arg4[%c1_31, %c0_32] : memref<4x16xf32, #tpu.memory_space<vmem>>, vector<1x16xf32>
    %80 = arith.sitofp %78 : vector<1x16xi32> to vector<1x16xf32>
    %81 = arith.mulf %79, %80 : vector<1x16xf32>
    %82 = arith.fptosi %81 : vector<1x16xf32> to vector<1x16xi32>
    %c1_i32_33 = arith.constant 1 : i32
    %83 = vector.broadcast %c1_i32_33 : i32 to vector<1x16xi32>
    %84 = arith.subi %78, %83 : vector<1x16xi32>
    %c0_i32_34 = arith.constant 0 : i32
    %85 = vector.broadcast %c0_i32_34 : i32 to vector<1x16xi32>
    %86 = arith.maxsi %84, %85 : vector<1x16xi32>
    %87 = arith.minsi %82, %86 : vector<1x16xi32>
    %c0_i32_35 = arith.constant 0 : i32
    %88 = vector.broadcast %c0_i32_35 : i32 to vector<1x16xi32>
    %89 = arith.cmpi sgt, %78, %88 : vector<1x16xi32>
    %90 = arith.addi %72, %87 : vector<1x16xi32>
    %c31_i32_36 = arith.constant 31 : i32
    %91 = vector.broadcast %c31_i32_36 : i32 to vector<1x16xi32>
    %92 = arith.select %89, %90, %91 : vector<1x16xi1>, vector<1x16xi32>
    %93 = tpu.iota {dimensions = array<i32: 0>} : vector<32x16xi32>
    %94 = vector.broadcast %92 : vector<1x16xi32> to vector<32x16xi32>
    %95 = arith.cmpi eq, %93, %94 : vector<32x16xi32>
    %c0_i32_37 = arith.constant 0 : i32
    %96 = vector.shape_cast %2 : vector<32x1xi32> to vector<32x1xi32>
    %97 = vector.broadcast %96 : vector<32x1xi32> to vector<32x16xi32>
    %98 = vector.broadcast %c0_i32_37 : i32 to vector<32x16xi32>
    %99 = arith.select %95, %97, %98 : vector<32x16xi1>, vector<32x16xi32>
    %cst_38 = arith.constant dense<0> : vector<16xi32>
    %100 = vector.multi_reduction <add>, %99, %cst_38 [0] : vector<32x16xi32> to vector<16xi32>
    %101 = vector.shape_cast %100 : vector<16xi32> to vector<1x16xi32>
    %102 = arith.select %89, %101, %58 : vector<1x16xi1>, vector<1x16xi32>
    %103 = arith.extui %95 : vector<32x16xi1> to vector<32x16xi32>
    %104 = arith.sitofp %103 : vector<32x16xi32> to vector<32x16xf32>
    %cst_39 = arith.constant dense<0.000000e+00> : vector<32x1xf32>
    %105 = tpu.matmul %104, %19, %cst_39 {dimension_numbers = #tpu.dot_dimension_numbers<[1], [0], [0], [1], [0, 0, 1, 1], [], []>} : vector<32x16xf32>, vector<16x1xf32>, vector<32x1xf32> -> vector<32x1xf32>
    %106 = arith.addf %62, %105 : vector<32x1xf32>
    %c2 = arith.constant 2 : index
    %c0_40 = arith.constant 0 : index
    %107 = vector.load %arg5[%c2, %c0_40] : memref<5x16xi32, #tpu.memory_space<vmem>>, vector<1x16xi32>
    tpu.vector_store %arg5[%c2, %c0_40], %102 {strides = array<i32>} : memref<5x16xi32, #tpu.memory_space<vmem>>, vector<1x16xi32>,
    %c1_41 = arith.constant 1 : index
    %c0_42 = arith.constant 0 : index
    %108 = vector.load %arg6[%c1_41, %c0_42] : memref<4x16xi32, #tpu.memory_space<vmem>>, vector<1x16xi32>
    tpu.vector_store %arg6[%c1_41, %c0_42], %92 {strides = array<i32>} : memref<4x16xi32, #tpu.memory_space<vmem>>, vector<1x16xi32>,
    %109 = vector.broadcast %102 : vector<1x16xi32> to vector<16x16xi32>
    %110 = arith.cmpi eq, %18, %109 : vector<16x16xi32>
    %c0_i32_43 = arith.constant 0 : i32
    %111 = vector.shape_cast %0 : vector<16x1xi32> to vector<16x1xi32>
    %112 = vector.broadcast %111 : vector<16x1xi32> to vector<16x16xi32>
    %113 = vector.broadcast %c0_i32_43 : i32 to vector<16x16xi32>
    %114 = arith.select %110, %112, %113 : vector<16x16xi1>, vector<16x16xi32>
    %cst_44 = arith.constant dense<0> : vector<16xi32>
    %115 = vector.multi_reduction <add>, %114, %cst_44 [0] : vector<16x16xi32> to vector<16xi32>
    %116 = vector.shape_cast %115 : vector<16xi32> to vector<1x16xi32>
    %c0_i32_45 = arith.constant 0 : i32
    %117 = vector.shape_cast %1 : vector<16x1xi32> to vector<16x1xi32>
    %118 = vector.broadcast %117 : vector<16x1xi32> to vector<16x16xi32>
    %119 = vector.broadcast %c0_i32_45 : i32 to vector<16x16xi32>
    %120 = arith.select %110, %118, %119 : vector<16x16xi1>, vector<16x16xi32>
    %cst_46 = arith.constant dense<0> : vector<16xi32>
    %121 = vector.multi_reduction <add>, %120, %cst_46 [0] : vector<16x16xi32> to vector<16xi32>
    %122 = vector.shape_cast %121 : vector<16xi32> to vector<1x16xi32>
    %c2_47 = arith.constant 2 : index
    %c0_48 = arith.constant 0 : index
    %123 = vector.load %arg4[%c2_47, %c0_48] : memref<4x16xf32, #tpu.memory_space<vmem>>, vector<1x16xf32>
    %124 = arith.sitofp %122 : vector<1x16xi32> to vector<1x16xf32>
    %125 = arith.mulf %123, %124 : vector<1x16xf32>
    %126 = arith.fptosi %125 : vector<1x16xf32> to vector<1x16xi32>
    %c1_i32_49 = arith.constant 1 : i32
    %127 = vector.broadcast %c1_i32_49 : i32 to vector<1x16xi32>
    %128 = arith.subi %122, %127 : vector<1x16xi32>
    %c0_i32_50 = arith.constant 0 : i32
    %129 = vector.broadcast %c0_i32_50 : i32 to vector<1x16xi32>
    %130 = arith.maxsi %128, %129 : vector<1x16xi32>
    %131 = arith.minsi %126, %130 : vector<1x16xi32>
    %c0_i32_51 = arith.constant 0 : i32
    %132 = vector.broadcast %c0_i32_51 : i32 to vector<1x16xi32>
    %133 = arith.cmpi sgt, %122, %132 : vector<1x16xi32>
    %134 = arith.addi %116, %131 : vector<1x16xi32>
    %c31_i32_52 = arith.constant 31 : i32
    %135 = vector.broadcast %c31_i32_52 : i32 to vector<1x16xi32>
    %136 = arith.select %133, %134, %135 : vector<1x16xi1>, vector<1x16xi32>
    %137 = tpu.iota {dimensions = array<i32: 0>} : vector<32x16xi32>
    %138 = vector.broadcast %136 : vector<1x16xi32> to vector<32x16xi32>
    %139 = arith.cmpi eq, %137, %138 : vector<32x16xi32>
    %c0_i32_53 = arith.constant 0 : i32
    %140 = vector.shape_cast %2 : vector<32x1xi32> to vector<32x1xi32>
    %141 = vector.broadcast %140 : vector<32x1xi32> to vector<32x16xi32>
    %142 = vector.broadcast %c0_i32_53 : i32 to vector<32x16xi32>
    %143 = arith.select %139, %141, %142 : vector<32x16xi1>, vector<32x16xi32>
    %cst_54 = arith.constant dense<0> : vector<16xi32>
    %144 = vector.multi_reduction <add>, %143, %cst_54 [0] : vector<32x16xi32> to vector<16xi32>
    %145 = vector.shape_cast %144 : vector<16xi32> to vector<1x16xi32>
    %146 = arith.select %133, %145, %102 : vector<1x16xi1>, vector<1x16xi32>
    %147 = arith.extui %139 : vector<32x16xi1> to vector<32x16xi32>
    %148 = arith.sitofp %147 : vector<32x16xi32> to vector<32x16xf32>
    %cst_55 = arith.constant dense<0.000000e+00> : vector<32x1xf32>
    %149 = tpu.matmul %148, %19, %cst_55 {dimension_numbers = #tpu.dot_dimension_numbers<[1], [0], [0], [1], [0, 0, 1, 1], [], []>} : vector<32x16xf32>, vector<16x1xf32>, vector<32x1xf32> -> vector<32x1xf32>
    %150 = arith.addf %106, %149 : vector<32x1xf32>
    %c3 = arith.constant 3 : index
    %c0_56 = arith.constant 0 : index
    %151 = vector.load %arg5[%c3, %c0_56] : memref<5x16xi32, #tpu.memory_space<vmem>>, vector<1x16xi32>
    tpu.vector_store %arg5[%c3, %c0_56], %146 {strides = array<i32>} : memref<5x16xi32, #tpu.memory_space<vmem>>, vector<1x16xi32>,
    %c2_57 = arith.constant 2 : index
    %c0_58 = arith.constant 0 : index
    %152 = vector.load %arg6[%c2_57, %c0_58] : memref<4x16xi32, #tpu.memory_space<vmem>>, vector<1x16xi32>
    tpu.vector_store %arg6[%c2_57, %c0_58], %136 {strides = array<i32>} : memref<4x16xi32, #tpu.memory_space<vmem>>, vector<1x16xi32>,
    %153 = vector.broadcast %146 : vector<1x16xi32> to vector<16x16xi32>
    %154 = arith.cmpi eq, %18, %153 : vector<16x16xi32>
    %c0_i32_59 = arith.constant 0 : i32
    %155 = vector.shape_cast %0 : vector<16x1xi32> to vector<16x1xi32>
    %156 = vector.broadcast %155 : vector<16x1xi32> to vector<16x16xi32>
    %157 = vector.broadcast %c0_i32_59 : i32 to vector<16x16xi32>
    %158 = arith.select %154, %156, %157 : vector<16x16xi1>, vector<16x16xi32>
    %cst_60 = arith.constant dense<0> : vector<16xi32>
    %159 = vector.multi_reduction <add>, %158, %cst_60 [0] : vector<16x16xi32> to vector<16xi32>
    %160 = vector.shape_cast %159 : vector<16xi32> to vector<1x16xi32>
    %c0_i32_61 = arith.constant 0 : i32
    %161 = vector.shape_cast %1 : vector<16x1xi32> to vector<16x1xi32>
    %162 = vector.broadcast %161 : vector<16x1xi32> to vector<16x16xi32>
    %163 = vector.broadcast %c0_i32_61 : i32 to vector<16x16xi32>
    %164 = arith.select %154, %162, %163 : vector<16x16xi1>, vector<16x16xi32>
    %cst_62 = arith.constant dense<0> : vector<16xi32>
    %165 = vector.multi_reduction <add>, %164, %cst_62 [0] : vector<16x16xi32> to vector<16xi32>
    %166 = vector.shape_cast %165 : vector<16xi32> to vector<1x16xi32>
    %c3_63 = arith.constant 3 : index
    %c0_64 = arith.constant 0 : index
    %167 = vector.load %arg4[%c3_63, %c0_64] : memref<4x16xf32, #tpu.memory_space<vmem>>, vector<1x16xf32>
    %168 = arith.sitofp %166 : vector<1x16xi32> to vector<1x16xf32>
    %169 = arith.mulf %167, %168 : vector<1x16xf32>
    %170 = arith.fptosi %169 : vector<1x16xf32> to vector<1x16xi32>
    %c1_i32_65 = arith.constant 1 : i32
    %171 = vector.broadcast %c1_i32_65 : i32 to vector<1x16xi32>
    %172 = arith.subi %166, %171 : vector<1x16xi32>
    %c0_i32_66 = arith.constant 0 : i32
    %173 = vector.broadcast %c0_i32_66 : i32 to vector<1x16xi32>
    %174 = arith.maxsi %172, %173 : vector<1x16xi32>
    %175 = arith.minsi %170, %174 : vector<1x16xi32>
    %c0_i32_67 = arith.constant 0 : i32
    %176 = vector.broadcast %c0_i32_67 : i32 to vector<1x16xi32>
    %177 = arith.cmpi sgt, %166, %176 : vector<1x16xi32>
    %178 = arith.addi %160, %175 : vector<1x16xi32>
    %c31_i32_68 = arith.constant 31 : i32
    %179 = vector.broadcast %c31_i32_68 : i32 to vector<1x16xi32>
    %180 = arith.select %177, %178, %179 : vector<1x16xi1>, vector<1x16xi32>
    %181 = tpu.iota {dimensions = array<i32: 0>} : vector<32x16xi32>
    %182 = vector.broadcast %180 : vector<1x16xi32> to vector<32x16xi32>
    %183 = arith.cmpi eq, %181, %182 : vector<32x16xi32>
    %c0_i32_69 = arith.constant 0 : i32
    %184 = vector.shape_cast %2 : vector<32x1xi32> to vector<32x1xi32>
    %185 = vector.broadcast %184 : vector<32x1xi32> to vector<32x16xi32>
    %186 = vector.broadcast %c0_i32_69 : i32 to vector<32x16xi32>
    %187 = arith.select %183, %185, %186 : vector<32x16xi1>, vector<32x16xi32>
    %cst_70 = arith.constant dense<0> : vector<16xi32>
    %188 = vector.multi_reduction <add>, %187, %cst_70 [0] : vector<32x16xi32> to vector<16xi32>
    %189 = vector.shape_cast %188 : vector<16xi32> to vector<1x16xi32>
    %190 = arith.select %177, %189, %146 : vector<1x16xi1>, vector<1x16xi32>
    %191 = arith.extui %183 : vector<32x16xi1> to vector<32x16xi32>
    %192 = arith.sitofp %191 : vector<32x16xi32> to vector<32x16xf32>
    %cst_71 = arith.constant dense<0.000000e+00> : vector<32x1xf32>
    %193 = tpu.matmul %192, %19, %cst_71 {dimension_numbers = #tpu.dot_dimension_numbers<[1], [0], [0], [1], [0, 0, 1, 1], [], []>} : vector<32x16xf32>, vector<16x1xf32>, vector<32x1xf32> -> vector<32x1xf32>
    %194 = arith.addf %150, %193 : vector<32x1xf32>
    %c4 = arith.constant 4 : index
    %c0_72 = arith.constant 0 : index
    %195 = vector.load %arg5[%c4, %c0_72] : memref<5x16xi32, #tpu.memory_space<vmem>>, vector<1x16xi32>
    tpu.vector_store %arg5[%c4, %c0_72], %190 {strides = array<i32>} : memref<5x16xi32, #tpu.memory_space<vmem>>, vector<1x16xi32>,
    %c3_73 = arith.constant 3 : index
    %c0_74 = arith.constant 0 : index
    %196 = vector.load %arg6[%c3_73, %c0_74] : memref<4x16xi32, #tpu.memory_space<vmem>>, vector<1x16xi32>
    tpu.vector_store %arg6[%c3_73, %c0_74], %180 {strides = array<i32>} : memref<4x16xi32, #tpu.memory_space<vmem>>, vector<1x16xi32>,
    %cst_75 = arith.constant 0.000000e+00 : f32
    %197 = vector.broadcast %cst_75 : f32 to vector<32x1xf32>
    %198 = arith.cmpf oeq, %194, %197 : vector<32x1xf32>
    %199 = arith.extui %198 : vector<32x1xi1> to vector<32x1xi32>
    %c0_76 = arith.constant 0 : index
    %c0_77 = arith.constant 0 : index
    %200 = vector.load %arg7[%c0_76, %c0_77] : memref<32x1xi32, #tpu.memory_space<vmem>>, vector<32x1xi32>
    tpu.vector_store %arg7[%c0_76, %c0_77], %199 {strides = array<i32>} : memref<32x1xi32, #tpu.memory_space<vmem>>, vector<32x1xi32>,
    return
  }
}

</mosaic_0001>

<bundles_post_ra>
// kernel: tpu_custom_call.1
= control target key start
LH: loop header
LB: loop body
LE: loop exit
PB: predicated region body
PF: predicated region fallthrough
CT: control target
= control target key end

     0   :  { %13 = vsyncpa [#allocation3], 0  ;;  %v704_v2 = vmov 0   ;;  %s1059_s0 = inlined_call_operand.vmem [shape: s32[16,1], index: 0, kind: input, shape index: {}]   ;;  %s1060_s1 = inlined_call_operand.vmem [shape: s32[16,1], index: 1, kind: input, shape index: {}]   ;;  %s1061_s2 = inlined_call_operand.vmem [shape: s32[32,1], index: 2, kind: input, shape index: {}]   ;;  %s1062_s3 = inlined_call_operand.vmem [shape: f32[1,16], index: 3, kind: input, shape index: {}]   ;;  %s1063_s4 = inlined_call_operand.vmem [shape: f32[4,16], index: 4, kind: input, shape index: {}]   ;;  %s1064_s5 = inlined_call_operand.hbm [shape: s32[5,16], index: 5, kind: output, shape index: {0}]   ;;  %s1065_s6 = inlined_call_operand.hbm [shape: s32[4,16], index: 6, kind: output, shape index: {1}]   ;;  %s1066_s7 = inlined_call_operand.vmem [shape: s32[32,1], index: 7, kind: output, shape index: {2}]  }
   0x1   :  { %v25_v0 = vld [vmem:[%s1059_s0] sm:$0xff]  ;;  %649 = vset.pattern.permute.xlu0 %v704_v2  ;;  %650 = vset.pattern.permute.xlu1 %v704_v2 }
   0x2   :  { %v27_v1 = vld [vmem:[%s1060_s1] sm:$0xff]  ;;  %39 = vperm.xlu0 %649, %v25_v0   ;;  %651 = vset.pattern.permute.xlu2 %v704_v2 }
   0x3   :  { %79 = vperm.xlu1 %650, %v27_v1   ;;  %v29_v3 = vld [vmem:[%s1061_s2] sm:$0xff] }
   0x4   :  { %14 = vsyncpa [#allocation5], 0  ;;  %115 = vperm.xlu2 %651, %v29_v3   ;;  %v26_v4 = vld [vmem:[%s1059_s0 + $0x8] sm:$0xff]  ;;  %v31_v7 = vld [vmem:[%s1061_s2 + $0x10] sm:$0xff]  ;;  %vm49_vm3 = vcmask 130048   ;;  %v62_v26 = vlaneseq  ;;  %v705_v27 = vmov 1.0  }
   0x5   :  { %v28_v5 = vld [vmem:[%s1060_s1 + $0x8] sm:$0xff]  ;;  %v32_v8 = vld [vmem:[%s1061_s2 + $0x18] sm:$0xff]  ;;  %v33_v9 = vld [vmem:[%s1062_s3] sm:$0x1]  ;;  %288 = vmatpush.msra.mxu1 %v705_v27  ;;  %247 = vmatpush.msra.mxu0 %v705_v27  ;;  %vm60_vm5 = vcmask 122880   ;;  %s553_s26 = sshll.u32 %s1064_s5, 4  ;;  %s554_s26 = int_to_ptr.hbm [resolvable:$true] %s553_s26 }
   0x6   :  { %v30_v6 = vld [vmem:[%s1061_s2 + $0x8] sm:$0xff]  ;;  %v34_v10 = vmul.f32 32.0, %v33_v9  ;;  %398 = vmatpush.msra.mxu2 %v705_v27  ;;  %512 = vmatpush.msra.mxu3 %v705_v27  ;;  %v791_v31 = vshrl.u32 %v62_v26, 7  ;;  %v95_v56 = vld [vmem:[%s1063_s4] sm:$0x1]  ;;  %s708_s27 = smov [#allocation4]  }
   0x7   :  { %289 = vmatpush.msra.mxu1 %v705_v27  ;;  %248 = vmatpush.msra.mxu0 %v705_v27  ;;  %s562_s28 = sshll.u32 %s708_s27, 4  ;;  %s564_s8 = sshll.u32 %s1065_s6, 4  ;;  %s563_s28 = int_to_ptr.vmem [resolvable:$true] %s562_s28  ;;  %s565_s8 = int_to_ptr.hbm [resolvable:$true] %s564_s8 }
   0x8   :  { %v620_v11 = vceil.f32 %v34_v10  ;;  %v621_v12 = vfloor.f32 %v34_v10  ;;  %vm619_vm0 = vcmp.lt.s32.totalorder %v34_v10, 0  ;;  %399 = vmatpush.msra.mxu2 %v705_v27  ;;  %513 = vmatpush.msra.mxu3 %v705_v27  ;;  %v794_v33 = vadd.s32 8, %v791_v31 }
   0x9   :  { %v823_v9 = vadd.s32 24, %v791_v31 }
   0xa   :  { %42 = vperm.xlu0 %649, %v26_v4   ;;  %v622_v13 = vsel %vm619_vm0, %v620_v11, %v621_v12 }
   0xb   :  { %82 = vperm.xlu1 %650, %v28_v5   ;;  %v623_v14 = vcvt.f32.s32 %v622_v13 }
   0xc   :  { %118 = vperm.xlu2 %651, %v30_v6  }
   0xd   :  { %vm36_vm1 = vcmp.lt.s32.totalorder %v623_v14, 31 }
   0xe   :  { %v37_v15 = vsel %vm36_vm1, %v623_v14, 31 }
   0xf   :  { %v44_v17 = vperm.slane %v37_v15, 0  ;;  %v706_v15 = vmov 0.0  }
  0x12   :  { %121 = vperm.xlu0 %649, %v31_v7  }
  0x13   :  { %124 = vperm.xlu1 %650, %v32_v8   ;;  %v820_v8 = vadd.s32 16, %v791_v31 }
  0x5e   :  { %v817_v0 = vpop.permute.xlu2 %115 }
  0x66   :  { %v827_v12 = vpop.permute.xlu2 %118 }
  0x74   :  { %v779_v16 = vpop.permute.xlu0 %39 }
  0x75   :  { %vm45_vm2 = vcmp.le.s32.totalorder %v779_v16, %v44_v17  ;;  %v789_v28 = vpop.permute.xlu1 %79 }
  0x76   :  { %v47_v18 = vsel %vm45_vm2, 1, %v704_v2 }
  0x77   :  { %v50_v21 = vsel %vm49_vm3, %v47_v18, 0 }
  0x7c   :  { %v783_v19 = vpop.permute.xlu0 %42 }
  0x7d   :  { %vm46_vm4 = vcmp.le.s32.totalorder %v783_v19, %v44_v17  ;;  %v798_v36 = vpop.permute.xlu1 %82 }
  0x7e   :  { %v48_v20 = vsel %vm46_vm4, 1, %v704_v2 }
  0x7f   :  { %v51_v22 = vsel %vm49_vm3, %v48_v20, 0 }
  0x80   :  { %v52_v23 = vadd.s32 %v51_v22, %v50_v21 }
  0x82   :  { %v53_v24 = vrot.slane %v52_v23, 4 }
  0x84   :  { %v54_v25 = vadd.s32 %v53_v24, %v52_v23  ;;  %v833_v13 = vpop.permute.xlu0 %121 }
  0x85   :  { %v840_v20 = vpop.permute.xlu1 %124 }
  0x86   :  { %v55_v29 = vrot.slane %v54_v25, 2 }
  0x88   :  { %v56_v30 = vadd.s32 %v55_v29, %v54_v25 }
  0x8a   :  { %v57_v32 = vrot.slane %v56_v30, 1 }
  0x8c   :  { %v58_v34 = vadd.s32 %v57_v32, %v56_v30 }
  0x8e   :  { %v796_v35 = vadd.s32 4294967295, %v58_v34 }
  0x90   :  { %vm65_vm6 = vcmp.eq.s32.totalorder %v791_v31, %v796_v35  ;;  %vm66_vm7 = vcmp.eq.s32.totalorder %v794_v33, %v796_v35  ;;  %61 = vst.msk [vmem:[#allocation2] sm:$0x1] %vm60_vm5, %v796_v35 }
  0x91   :  { %v67_v37 = vsel %vm65_vm6, %v779_v16, 0  ;;  %v68_v38 = vsel %vm66_vm7, %v783_v19, 0  ;;  %v84_v39 = vsel %vm65_vm6, %v789_v28, 0  ;;  %v85_v40 = vsel %vm66_vm7, %v798_v36, 0 }
  0x92   :  { %v69_v41 = vsel %vm49_vm3, %v67_v37, 0  ;;  %v70_v42 = vsel %vm49_vm3, %v68_v38, 0  ;;  %v86_v43 = vsel %vm49_vm3, %v84_v39, 0  ;;  %v87_v44 = vsel %vm49_vm3, %v85_v40, 0 }
  0x93   :  { %v71_v45 = vadd.s32 %v70_v42, %v69_v41  ;;  %v88_v46 = vadd.s32 %v87_v44, %v86_v43 }
  0x95   :  { %v89_v47 = vrot.slane %v88_v46, 4  ;;  %v72_v48 = vrot.slane %v71_v45, 4 }
  0x97   :  { %v90_v49 = vadd.s32 %v89_v47, %v88_v46  ;;  %v73_v51 = vadd.s32 %v72_v48, %v71_v45 }
  0x99   :  { %v91_v50 = vrot.slane %v90_v49, 2  ;;  %v74_v54 = vrot.slane %v73_v51, 2 }
  0x9b   :  { %v92_v52 = vadd.s32 %v91_v50, %v90_v49  ;;  %v75_v58 = vadd.s32 %v74_v54, %v73_v51 }
  0x9d   :  { %v93_v53 = vrot.slane %v92_v52, 1  ;;  %v76_v63 = vrot.slane %v75_v58, 1 }
  0x9f   :  { %v94_v55 = vadd.s32 %v93_v53, %v92_v52  ;;  %v77_v5 = vadd.s32 %v76_v63, %v75_v58  ;;  %v178_v63 = vld [vmem:[%s1063_s4 + $0x1] sm:$0x1] }
  0xa1   :  { %v96_v57 = vcvt.s32.f32 %v94_v55  ;;  %v583_v59 = vadd.s32 4294967295, %v94_v55  ;;  %vm104_vm11 = vcmp.gt.s32.totalorder %v94_v55, 0 }
  0xa3   :  { %v97_v60 = vmul.f32 %v96_v57, %v95_v56  ;;  %vm100_vm9 = vcmp.gt.s32.totalorder %v583_v59, 0 }
  0xa4   :  { %v101_v4 = vsel %vm100_vm9, %v583_v59, 0 }
  0xa5   :  { %vm624_vm8 = vcmp.lt.s32.totalorder %v97_v60, 0  ;;  %v625_v61 = vceil.f32 %v97_v60  ;;  %v626_v62 = vfloor.f32 %v97_v60 }
  0xa7   :  { %v627_v1 = vsel %vm624_vm8, %v625_v61, %v626_v62 }
  0xa8   :  { %v628_v3 = vcvt.f32.s32 %v627_v1 }
  0xaa   :  { %vm102_vm10 = vcmp.lt.s32.totalorder %v628_v3, %v101_v4 }
  0xab   :  { %v103_v6 = vsel %vm102_vm10, %v628_v3, %v101_v4 }
  0xac   :  { %v105_v7 = vadd.s32 %v103_v6, %v77_v5 }
  0xae   :  { %v106_v10 = vsel %vm104_vm11, %v105_v7, 31 }
  0xaf   :  { %v109_v11 = vperm.slane %v106_v10, 0  ;;  %153 = vst.msk [vmem:[#allocation4] sm:$0x1] %vm60_vm5, %v106_v10 }
  0xb1   :  { %vm110_vm12 = vcmp.eq.s32.totalorder %v791_v31, %v109_v11  ;;  %vm111_vm13 = vcmp.eq.s32.totalorder %v794_v33, %v109_v11  ;;  %vm112_vm14 = vcmp.eq.s32.totalorder %v820_v8, %v109_v11  ;;  %vm113_vm15 = vcmp.eq.s32.totalorder %v823_v9, %v109_v11 }
  0xb2   :  { %v126_v14 = vsel %vm110_vm12, %v817_v0, 0  ;;  %v584_v17 = vsel %vm110_vm12, 1.0, %v706_v15  ;;  %v127_v18 = vsel %vm111_vm13, %v827_v12, 0  ;;  %v128_v23 = vsel %vm112_vm14, %v833_v13, 0 }
  0xb3   :  { %v130_v21 = vsel %vm49_vm3, %v126_v14, 0  ;;  %597 = vmatmul.msk.f32.vlgmr.msra.gmra.mxu1 %vm49_vm3, %v584_v17  ;;  %v131_v22 = vsel %vm49_vm3, %v127_v18, 0  ;;  %v132_v25 = vsel %vm49_vm3, %v128_v23, 0  ;;  %v129_v26 = vsel %vm113_vm15, %v840_v20, 0 }
  0xb4   :  { %v134_v24 = vadd.s32 %v131_v22, %v130_v21  ;;  %v133_v27 = vsel %vm49_vm3, %v129_v26, 0  ;;  %v585_v32 = vsel %vm111_vm13, 1.0, %v706_v15  ;;  %v586_v40 = vsel %vm112_vm14, 1.0, %v706_v15 }
  0xb5   :  { %v135_v29 = vadd.s32 %v133_v27, %v132_v25  ;;  %v587_v51 = vsel %vm113_vm15, 1.0, %v706_v15 }
  0xb7   :  { %v136_v30 = vadd.s32 %v135_v29, %v134_v24 }
  0xb9   :  { %v137_v34 = vrot.slane %v136_v30, 4 }
  0xbb   :  { %598 = vmatmul.msk.f32.gmra.mxu1 %vm49_vm3, %v585_v32  ;;  %v138_v37 = vadd.s32 %v137_v34, %v136_v30 }
  0xbd   :  { %v139_v38 = vrot.slane %v138_v37, 2 }
  0xbf   :  { %v140_v39 = vadd.s32 %v139_v38, %v138_v37 }
  0xc1   :  { %v141_v41 = vrot.slane %v140_v39, 1 }
  0xc3   :  { %599 = vmatmul.msk.f32.gmra.mxu1 %vm49_vm3, %v586_v40  ;;  %v142_v42 = vadd.s32 %v141_v41, %v140_v39 }
  0xc5   :  { %v863_v43 = vsel %vm104_vm11, %v142_v42, %v796_v35 }
  0xc6   :  { %vm154_vm0 = vcmp.eq.s32.totalorder %v791_v31, %v863_v43  ;;  %vm155_vm1 = vcmp.eq.s32.totalorder %v794_v33, %v863_v43  ;;  %152 = vst.msk [vmem:[#allocation2 + $0x1] sm:$0x1] %vm60_vm5, %v863_v43 }
  0xc7   :  { %v156_v44 = vsel %vm154_vm0, %v779_v16, 0  ;;  %v157_v45 = vsel %vm155_vm1, %v783_v19, 0  ;;  %v167_v46 = vsel %vm154_vm0, %v789_v28, 0  ;;  %v168_v47 = vsel %vm155_vm1, %v798_v36, 0 }
  0xc8   :  { %v158_v35 = vsel %vm49_vm3, %v156_v44, 0  ;;  %v159_v48 = vsel %vm49_vm3, %v157_v45, 0  ;;  %v169_v49 = vsel %vm49_vm3, %v167_v46, 0  ;;  %v170_v50 = vsel %vm49_vm3, %v168_v47, 0 }
  0xc9   :  { %v160_v52 = vadd.s32 %v159_v48, %v158_v35  ;;  %v171_v53 = vadd.s32 %v170_v50, %v169_v49 }
  0xcb   :  { %600 = vmatmul.msk.f32.gmra.mxu1 %vm49_vm3, %v587_v51  ;;  %v172_v54 = vrot.slane %v171_v53, 4  ;;  %v161_v55 = vrot.slane %v160_v52, 4 }
  0xcd   :  { %v173_v56 = vadd.s32 %v172_v54, %v171_v53  ;;  %v162_v58 = vadd.s32 %v161_v55, %v160_v52 }
  0xcf   :  { %v174_v57 = vrot.slane %v173_v56, 2  ;;  %v163_v61 = vrot.slane %v162_v58, 2 }
  0xd1   :  { %v175_v59 = vadd.s32 %v174_v57, %v173_v56  ;;  %v164_v3 = vadd.s32 %v163_v61, %v162_v58 }
  0xd3   :  { %v176_v60 = vrot.slane %v175_v59, 1  ;;  %v165_v10 = vrot.slane %v164_v3, 1 }
  0xd5   :  { %v177_v62 = vadd.s32 %v176_v60, %v175_v59  ;;  %v166_v18 = vadd.s32 %v165_v10, %v164_v3  ;;  %v329_v10 = vld [vmem:[%s1063_s4 + $0x2] sm:$0x1] }
  0xd7   :  { %v179_v1 = vcvt.s32.f32 %v177_v62  ;;  %v588_v4 = vadd.s32 4294967295, %v177_v62  ;;  %vm187_vm7 = vcmp.gt.s32.totalorder %v177_v62, 0 }
  0xd9   :  { %v180_v5 = vmul.f32 %v179_v1, %v178_v63  ;;  %vm183_vm4 = vcmp.gt.s32.totalorder %v588_v4, 0 }
  0xda   :  { %v184_v17 = vsel %vm183_vm4, %v588_v4, 0 }
  0xdb   :  { %vm629_vm2 = vcmp.lt.s32.totalorder %v180_v5, 0  ;;  %v630_v6 = vceil.f32 %v180_v5  ;;  %v631_v7 = vfloor.f32 %v180_v5 }
  0xdd   :  { %v632_v11 = vsel %vm629_vm2, %v630_v6, %v631_v7 }
  0xde   :  { %v633_v14 = vcvt.f32.s32 %v632_v11 }
  0xe0   :  { %vm185_vm6 = vcmp.lt.s32.totalorder %v633_v14, %v184_v17 }
  0xe1   :  { %v186_v21 = vsel %vm185_vm6, %v633_v14, %v184_v17 }
  0xe2   :  { %v188_v22 = vadd.s32 %v186_v21, %v166_v18 }
  0xe4   :  { %v189_v23 = vsel %vm187_vm7, %v188_v22, 31 }
  0xe5   :  { %v190_v24 = vperm.slane %v189_v23, 0  ;;  %304 = vst.msk [vmem:[#allocation4 + $0x1] sm:$0x1] %vm60_vm5, %v189_v23 }
  0xe7   :  { %vm191_vm8 = vcmp.eq.s32.totalorder %v791_v31, %v190_v24  ;;  %vm192_vm9 = vcmp.eq.s32.totalorder %v794_v33, %v190_v24  ;;  %vm193_vm10 = vcmp.eq.s32.totalorder %v820_v8, %v190_v24  ;;  %vm194_vm11 = vcmp.eq.s32.totalorder %v823_v9, %v190_v24 }
  0xe8   :  { %v195_v25 = vsel %vm191_vm8, %v817_v0, 0  ;;  %v589_v26 = vsel %vm191_vm8, 1.0, %v706_v15  ;;  %v196_v27 = vsel %vm192_vm9, %v827_v12, 0  ;;  %v197_v32 = vsel %vm193_vm10, %v833_v13, 0 }
  0xe9   :  { %v199_v29 = vsel %vm49_vm3, %v195_v25, 0  ;;  %593 = vmatmul.msk.f32.vlgmr.msra.gmra.mxu0 %vm49_vm3, %v589_v26  ;;  %v200_v30 = vsel %vm49_vm3, %v196_v27, 0  ;;  %v201_v37 = vsel %vm49_vm3, %v197_v32, 0  ;;  %v198_v38 = vsel %vm194_vm11, %v840_v20, 0 }
  0xea   :  { %v203_v34 = vadd.s32 %v200_v30, %v199_v29  ;;  %v202_v39 = vsel %vm49_vm3, %v198_v38, 0  ;;  %v590_v42 = vsel %vm192_vm9, 1.0, %v706_v15  ;;  %v591_v35 = vsel %vm193_vm10, 1.0, %v706_v15 }
  0xeb   :  { %v204_v40 = vadd.s32 %v202_v39, %v201_v37  ;;  %v592_v58 = vsel %vm194_vm11, 1.0, %v706_v15 }
  0xed   :  { %v205_v41 = vadd.s32 %v204_v40, %v203_v34 }
  0xef   :  { %v206_v44 = vrot.slane %v205_v41, 4 }
  0xf1   :  { %594 = vmatmul.msk.f32.gmra.mxu0 %vm49_vm3, %v590_v42  ;;  %v207_v45 = vadd.s32 %v206_v44, %v205_v41 }
  0xf3   :  { %v208_v46 = vrot.slane %v207_v45, 2 }
  0xf5   :  { %v209_v47 = vadd.s32 %v208_v46, %v207_v45 }
  0xf7   :  { %v210_v48 = vrot.slane %v209_v47, 1 }
  0xf9   :  { %595 = vmatmul.msk.f32.gmra.mxu0 %vm49_vm3, %v591_v35  ;;  %v211_v49 = vadd.s32 %v210_v48, %v209_v47 }
  0xfb   :  { %v918_v50 = vsel %vm187_vm7, %v211_v49, %v863_v43 }
  0xfc   :  { %vm305_vm12 = vcmp.eq.s32.totalorder %v791_v31, %v918_v50  ;;  %vm306_vm13 = vcmp.eq.s32.totalorder %v794_v33, %v918_v50  ;;  %303 = vst.msk [vmem:[#allocation2 + $0x2] sm:$0x1] %vm60_vm5, %v918_v50 }
  0xfd   :  { %v307_v51 = vsel %vm305_vm12, %v779_v16, 0  ;;  %v308_v52 = vsel %vm306_vm13, %v783_v19, 0  ;;  %v318_v53 = vsel %vm305_vm12, %v789_v28, 0  ;;  %v319_v54 = vsel %vm306_vm13, %v798_v36, 0 }
  0xfe   :  { %v309_v43 = vsel %vm49_vm3, %v307_v51, 0  ;;  %v310_v55 = vsel %vm49_vm3, %v308_v52, 0  ;;  %v320_v56 = vsel %vm49_vm3, %v318_v53, 0  ;;  %v321_v57 = vsel %vm49_vm3, %v319_v54, 0 }
  0xff   :  { %v311_v59 = vadd.s32 %v310_v55, %v309_v43  ;;  %v322_v60 = vadd.s32 %v321_v57, %v320_v56 }
 0x101   :  { %596 = vmatmul.msk.f32.gmra.mxu0 %vm49_vm3, %v592_v58  ;;  %v323_v61 = vrot.slane %v322_v60, 4  ;;  %v312_v62 = vrot.slane %v311_v59, 4 }
 0x103   :  { %v324_v63 = vadd.s32 %v323_v61, %v322_v60  ;;  %v313_v3 = vadd.s32 %v312_v62, %v311_v59 }
 0x105   :  { %v325_v1 = vrot.slane %v324_v63, 2  ;;  %v314_v6 = vrot.slane %v313_v3, 2 }
 0x107   :  { %v326_v4 = vadd.s32 %v325_v1, %v324_v63  ;;  %v315_v14 = vadd.s32 %v314_v6, %v313_v3 }
 0x109   :  { %v327_v5 = vrot.slane %v326_v4, 1  ;;  %v316_v23 = vrot.slane %v315_v14, 1 }
 0x10b   :  { %v328_v7 = vadd.s32 %v327_v5, %v326_v4  ;;  %v317_v27 = vadd.s32 %v316_v23, %v315_v14 }
 0x10d   :  { %v330_v11 = vcvt.s32.f32 %v328_v7  ;;  %v601_v17 = vadd.s32 4294967295, %v328_v7  ;;  %vm338_vm1 = vcmp.gt.s32.totalorder %v328_v7, 0 }
 0x10f   :  { %v331_v18 = vmul.f32 %v330_v11, %v329_v10  ;;  %vm334_vm15 = vcmp.gt.s32.totalorder %v601_v17, 0 }
 0x110   :  { %v335_v26 = vsel %vm334_vm15, %v601_v17, 0  ;;  %v443_v17 = vld [vmem:[%s1063_s4 + $0x3] sm:$0x1]  ;;  %s707_s4 = smov [#allocation2]  }
 0x111   :  { %vm634_vm14 = vcmp.lt.s32.totalorder %v331_v18, 0  ;;  %v635_v21 = vceil.f32 %v331_v18  ;;  %v636_v22 = vfloor.f32 %v331_v18  ;;  %s551_s23 = sshll.u32 %s707_s4, 4  ;;  %s552_s23 = int_to_ptr.vmem [resolvable:$true] %s551_s23 }
 0x113   :  { %v637_v24 = vsel %vm634_vm14, %v635_v21, %v636_v22 }
 0x114   :  { %v638_v25 = vcvt.f32.s32 %v637_v24 }
 0x116   :  { %vm336_vm0 = vcmp.lt.s32.totalorder %v638_v25, %v335_v26 }
 0x117   :  { %v337_v29 = vsel %vm336_vm0, %v638_v25, %v335_v26 }
 0x118   :  { %v339_v30 = vadd.s32 %v337_v29, %v317_v27 }
 0x11a   :  { %v340_v32 = vsel %vm338_vm1, %v339_v30, 31 }
 0x11b   :  { %v341_v34 = vperm.slane %v340_v32, 0  ;;  %418 = vst.msk [vmem:[#allocation4 + $0x2] sm:$0x1] %vm60_vm5, %v340_v32 }
 0x11d   :  { %vm342_vm2 = vcmp.eq.s32.totalorder %v791_v31, %v341_v34  ;;  %vm343_vm4 = vcmp.eq.s32.totalorder %v794_v33, %v341_v34  ;;  %vm344_vm6 = vcmp.eq.s32.totalorder %v820_v8, %v341_v34  ;;  %vm345_vm7 = vcmp.eq.s32.totalorder %v823_v9, %v341_v34 }
 0x11e   :  { %v346_v37 = vsel %vm342_vm2, %v817_v0, 0  ;;  %v602_v38 = vsel %vm342_vm2, 1.0, %v706_v15  ;;  %v347_v39 = vsel %vm343_vm4, %v827_v12, 0  ;;  %v348_v42 = vsel %vm344_vm6, %v833_v13, 0 }
 0x11f   :  { %v350_v40 = vsel %vm49_vm3, %v346_v37, 0  ;;  %606 = vmatmul.msk.f32.vlgmr.msra.gmra.mxu2 %vm49_vm3, %v602_v38  ;;  %v351_v41 = vsel %vm49_vm3, %v347_v39, 0  ;;  %v352_v45 = vsel %vm49_vm3, %v348_v42, 0  ;;  %v349_v46 = vsel %vm345_vm7, %v840_v20, 0 }
 0x120   :  { %v354_v44 = vadd.s32 %v351_v41, %v350_v40  ;;  %v353_v47 = vsel %vm49_vm3, %v349_v46, 0  ;;  %v603_v49 = vsel %vm343_vm4, 1.0, %v706_v15  ;;  %v604_v43 = vsel %vm344_vm6, 1.0, %v706_v15 }
 0x121   :  { %v355_v35 = vadd.s32 %v353_v47, %v352_v45  ;;  %v605_v3 = vsel %vm345_vm7, 1.0, %v706_v15 }
 0x123   :  { %v356_v48 = vadd.s32 %v355_v35, %v354_v44 }
 0x125   :  { %v357_v51 = vrot.slane %v356_v48, 4 }
 0x127   :  { %607 = vmatmul.msk.f32.gmra.mxu2 %vm49_vm3, %v603_v49  ;;  %v358_v52 = vadd.s32 %v357_v51, %v356_v48 }
 0x129   :  { %v359_v53 = vrot.slane %v358_v52, 2 }
 0x12b   :  { %v360_v54 = vadd.s32 %v359_v53, %v358_v52 }
 0x12d   :  { %v361_v55 = vrot.slane %v360_v54, 1 }
 0x12f   :  { %608 = vmatmul.msk.f32.gmra.mxu2 %vm49_vm3, %v604_v43  ;;  %v362_v56 = vadd.s32 %v361_v55, %v360_v54 }
 0x131   :  { %v973_v57 = vsel %vm338_vm1, %v362_v56, %v918_v50 }
 0x132   :  { %vm419_vm8 = vcmp.eq.s32.totalorder %v791_v31, %v973_v57  ;;  %vm420_vm9 = vcmp.eq.s32.totalorder %v794_v33, %v973_v57  ;;  %417 = vst.msk [vmem:[#allocation2 + $0x3] sm:$0x1] %vm60_vm5, %v973_v57 }
 0x133   :  { %v421_v58 = vsel %vm419_vm8, %v779_v16, 0  ;;  %v422_v59 = vsel %vm420_vm9, %v783_v19, 0  ;;  %v432_v60 = vsel %vm419_vm8, %v789_v28, 0  ;;  %v433_v61 = vsel %vm420_vm9, %v798_v36, 0 }
 0x134   :  { %v423_v50 = vsel %vm49_vm3, %v421_v58, 0  ;;  %v424_v62 = vsel %vm49_vm3, %v422_v59, 0  ;;  %v434_v63 = vsel %vm49_vm3, %v432_v60, 0  ;;  %v435_v1 = vsel %vm49_vm3, %v433_v61, 0 }
 0x135   :  { %v425_v4 = vadd.s32 %v424_v62, %v423_v50  ;;  %v436_v16 = vadd.s32 %v435_v1, %v434_v63 }
 0x137   :  { %609 = vmatmul.msk.f32.gmra.mxu2 %vm49_vm3, %v605_v3  ;;  %v437_v19 = vrot.slane %v436_v16, 4  ;;  %v426_v28 = vrot.slane %v425_v4, 4 }
 0x139   :  { %v438_v5 = vadd.s32 %v437_v19, %v436_v16  ;;  %v427_v6 = vadd.s32 %v426_v28, %v425_v4 }
 0x13b   :  { %v439_v36 = vrot.slane %v438_v5, 2  ;;  %v428_v11 = vrot.slane %v427_v6, 2 }
 0x13d   :  { %v440_v7 = vadd.s32 %v439_v36, %v438_v5  ;;  %v429_v21 = vadd.s32 %v428_v11, %v427_v6 }
 0x13f   :  { %v441_v10 = vrot.slane %v440_v7, 1  ;;  %v430_v26 = vrot.slane %v429_v21, 1 }
 0x141   :  { %v442_v14 = vadd.s32 %v441_v10, %v440_v7  ;;  %v431_v32 = vadd.s32 %v430_v26, %v429_v21 }
 0x143   :  { %v444_v18 = vcvt.s32.f32 %v442_v14  ;;  %v610_v22 = vadd.s32 4294967295, %v442_v14  ;;  %vm452_vm13 = vcmp.gt.s32.totalorder %v442_v14, 0 }
 0x145   :  { %v445_v23 = vmul.f32 %v444_v18, %v443_v17  ;;  %vm448_vm11 = vcmp.gt.s32.totalorder %v610_v22, 0 }
 0x146   :  { %v449_v30 = vsel %vm448_vm11, %v610_v22, 0 }
 0x147   :  { %vm639_vm10 = vcmp.lt.s32.totalorder %v445_v23, 0  ;;  %v640_v24 = vceil.f32 %v445_v23  ;;  %v641_v25 = vfloor.f32 %v445_v23 }
 0x149   :  { %v642_v27 = vsel %vm639_vm10, %v640_v24, %v641_v25 }
 0x14a   :  { %v643_v29 = vcvt.f32.s32 %v642_v27 }
 0x14c   :  { %vm450_vm12 = vcmp.lt.s32.totalorder %v643_v29, %v449_v30 }
 0x14d   :  { %v451_v34 = vsel %vm450_vm12, %v643_v29, %v449_v30 }
 0x14e   :  { %v453_v37 = vadd.s32 %v451_v34, %v431_v32 }
 0x150   :  { %v454_v38 = vsel %vm452_vm13, %v453_v37, 31 }
 0x151   :  { %v455_v39 = vperm.slane %v454_v38, 0  ;;  %532 = vst.msk [vmem:[#allocation4 + $0x3] sm:$0x1] %vm60_vm5, %v454_v38 }
 0x152   :  { %567 = dma.vmem_to_hbm [thread:$0]  %s563_s28, 64, %s565_s8, [#allocation5]  }
 0x153   :  { %vm456_vm14 = vcmp.eq.s32.totalorder %v791_v31, %v455_v39  ;;  %vm457_vm15 = vcmp.eq.s32.totalorder %v794_v33, %v455_v39  ;;  %vm458_vm0 = vcmp.eq.s32.totalorder %v820_v8, %v455_v39  ;;  %vm459_vm1 = vcmp.eq.s32.totalorder %v823_v9, %v455_v39  ;;  %v291_v9 = vpop.f32.mrf.mxu1 }
 0x154   :  { %v460_v40 = vsel %vm456_vm14, %v817_v0, 0  ;;  %v611_v41 = vsel %vm456_vm14, 1.0, %v706_v15  ;;  %v461_v42 = vsel %vm457_vm15, %v827_v12, 0  ;;  %v462_v45 = vsel %vm458_vm0, %v833_v13, 0 }
 0x155   :  { %v464_v44 = vsel %vm49_vm3, %v460_v40, 0  ;;  %615 = vmatmul.msk.f32.vlgmr.msra.gmra.mxu3 %vm49_vm3, %v611_v41  ;;  %v465_v31 = vsel %vm49_vm3, %v461_v42, 0  ;;  %v466_v47 = vsel %vm49_vm3, %v462_v45, 0  ;;  %v463_v0 = vsel %vm459_vm1, %v840_v20, 0 }
 0x156   :  { %v468_v46 = vadd.s32 %v465_v31, %v464_v44  ;;  %v467_v35 = vsel %vm49_vm3, %v463_v0, 0  ;;  %v612_v49 = vsel %vm457_vm15, 1.0, %v706_v15  ;;  %v613_v54 = vsel %vm458_vm0, 1.0, %v706_v15 }
 0x157   :  { %v469_v12 = vadd.s32 %v467_v35, %v466_v47  ;;  %v614_v33 = vsel %vm459_vm1, 1.0, %v706_v15 }
 0x159   :  { %v470_v48 = vadd.s32 %v469_v12, %v468_v46 }
 0x15b   :  { %v471_v51 = vrot.slane %v470_v48, 4  ;;  %v294_v58 = vpop.f32.mrf.mxu1 }
 0x15d   :  { %616 = vmatmul.msk.f32.gmra.mxu3 %vm49_vm3, %v612_v49  ;;  %v472_v52 = vadd.s32 %v471_v51, %v470_v48 }
 0x15f   :  { %v473_v13 = vrot.slane %v472_v52, 2 }
 0x161   :  { %v474_v53 = vadd.s32 %v473_v13, %v472_v52 }
 0x163   :  { %v475_v43 = vrot.slane %v474_v53, 1  ;;  %v297_v19 = vpop.f32.mrf.mxu1 }
 0x165   :  { %617 = vmatmul.msk.f32.gmra.mxu3 %vm49_vm3, %v613_v54  ;;  %v476_v20 = vadd.s32 %v475_v43, %v474_v53 }
 0x166   :  { %v250_v8 = vpop.f32.mrf.mxu0 }
 0x167   :  { %v477_v55 = vsel %vm452_vm13, %v476_v20, %v973_v57  ;;  %v292_v56 = vadd.f32 %v291_v9, %v250_v8 }
 0x168   :  { %531 = vst.msk [vmem:[#allocation2 + $0x4] sm:$0x1] %vm60_vm5, %v477_v55 }
 0x169   :  { %556 = dma.vmem_to_hbm [thread:$0]  %s552_s23, 128, %s554_s26, [#allocation3]  }
 0x16b   :  { %v300_v14 = vpop.f32.mrf.mxu1 }
 0x16d   :  { %618 = vmatmul.msk.f32.gmra.mxu3 %vm49_vm3, %v614_v33  ;;  %vm541_vm3 = vcmask 7168  }
 0x16e   :  { %v253_v57 = vpop.f32.mrf.mxu0 }
 0x16f   :  { %v295_v63 = vadd.f32 %v294_v58, %v253_v57 }
 0x176   :  { %v256_v3 = vpop.f32.mrf.mxu0 }
 0x177   :  { %v298_v36 = vadd.f32 %v297_v19, %v256_v3 }
 0x17e   :  { %v259_v11 = vpop.f32.mrf.mxu0 }
 0x17f   :  { %v301_v21 = vadd.f32 %v300_v14, %v259_v11 }
 0x1a2   :  { %v401_v15 = vpop.f32.mrf.mxu2 }
 0x1a3   :  { %v413_v59 = vadd.f32 %v401_v15, %v292_v56 }
 0x1aa   :  { %v404_v60 = vpop.f32.mrf.mxu2 }
 0x1ab   :  { %v414_v1 = vadd.f32 %v404_v60, %v295_v63 }
 0x1b2   :  { %v407_v28 = vpop.f32.mrf.mxu2 }
 0x1b3   :  { %v415_v6 = vadd.f32 %v407_v28, %v298_v36 }
 0x1ba   :  { %v410_v17 = vpop.f32.mrf.mxu2 }
 0x1bb   :  { %v416_v22 = vadd.f32 %v410_v17, %v301_v21 }
 0x1d8   :  { %v515_v61 = vpop.f32.mrf.mxu3 }
 0x1d9   :  { %v527_v50 = vadd.f32 %v515_v61, %v413_v59 }
 0x1db   :  { %vm533_vm5 = vcmp.eq.f32.partialorder %v527_v50, 0.0 }
 0x1dc   :  { %v537_v62 = vsel %vm533_vm5, 1, %v704_v2 }
 0x1dd   :  { %542 = vst.msk [vmem:[%s1066_s7] sm:$0xff] %vm541_vm3, %v537_v62 }
 0x1e0   :  { %v518_v4 = vpop.f32.mrf.mxu3 }
 0x1e1   :  { %v528_v16 = vadd.f32 %v518_v4, %v414_v1 }
 0x1e3   :  { %vm534_vm2 = vcmp.eq.f32.partialorder %v528_v16, 0.0 }
 0x1e4   :  { %v538_v5 = vsel %vm534_vm2, 1, %v704_v2 }
 0x1e5   :  { %543 = vst.msk [vmem:[%s1066_s7 + $0x8] sm:$0xff] %vm541_vm3, %v538_v5 }
 0x1e8   :  { %v521_v7 = vpop.f32.mrf.mxu3 }
 0x1e9   :  { %v529_v10 = vadd.f32 %v521_v7, %v415_v6 }
 0x1eb   :  { %vm535_vm4 = vcmp.eq.f32.partialorder %v529_v10, 0.0 }
 0x1ec   :  { %v539_v18 = vsel %vm535_vm4, 1, %v704_v2 }
 0x1ed   :  { %544 = vst.msk [vmem:[%s1066_s7 + $0x10] sm:$0xff] %vm541_vm3, %v539_v18 }
 0x1f0   :  { %v524_v23 = vpop.f32.mrf.mxu3 }
 0x1f1   :  { %v530_v24 = vadd.f32 %v524_v23, %v416_v22 }
 0x1f3   :  { %vm536_vm6 = vcmp.eq.f32.partialorder %v530_v24, 0.0 }
 0x1f4   :  { %v540_v25 = vsel %vm536_vm6, 1, %v704_v2 }
 0x1f5   :  { %545 = vst.msk [vmem:[%s1066_s7 + $0x18] sm:$0xff] %vm541_vm3, %v540_v25 }
 0x1f6   :  { %700 = dma.done.wait [#allocation3], 128  }
 0x1f7   :  { %701 = vsyncadd [#allocation3], 4294967168 }
 0x1f8   :  { %702 = dma.done.wait [#allocation5], 64  }
 0x1f9   :  { %703 = vsyncadd [#allocation5], 4294967232 }
 0x1fa   :  { %580 = vsyncpa [#allocation3], 1 }
 0x1fb   :  { %581 = vsyncpa [#allocation5], 1 }

</bundles_post_ra>
